<compile_context>
chip_gen: v6e
topology: v6e:2x2x1
jax: 0.10.0
libtpu: 0.0.40
codegen_flags: <defaults>
</compile_context>

<pallas_src>
import jax
import jax.numpy as jnp
from jax.experimental import pallas as pl
from jax.experimental.pallas import tpu as pltpu


def _make_channel_attention_kernel(hw_true, tile_hw, acc_w, n_hw, needs_mask):
    inv_hw = 1.0 / float(hw_true)
    k = tile_hw // acc_w                                # chunks per full block
    valid_last = hw_true - (n_hw - 1) * tile_hw         # valid lanes, last block
    k_last = -(-valid_last // acc_w)                    # chunks touched, last block

    def kernel(x_ref, w1_ref, w2_ref, o_ref, sum_acc, max_acc):
        # x_ref  : (1, C, tile_hw)  input block, HW on the lane axis
        # w1_ref : (hidden, C)      first 1x1 conv weight (PyTorch layout)
        # w2_ref : (C, hidden)      second 1x1 conv weight (PyTorch layout)
        # o_ref  : (1, C, 1)        sigmoid(channel attention) for this batch
        # sum_acc, max_acc : (C, acc_w) f32 lane-partial accumulators
        hw_i = pl.program_id(1)

        @pl.when(hw_i == 0)
        def _init():
            sum_acc[...] = jnp.zeros_like(sum_acc)
            max_acc[...] = jnp.full_like(max_acc, -jnp.inf)

        def load_chunk(j):
            # Lane-aligned static slice straight from the VMEM block.
            return x_ref[0, :, j * acc_w:(j + 1) * acc_w].astype(jnp.float32)

        def accumulate(n_chunks, mask_tail):
            # Register accumulation within the step; one scratch update/step.
            s = None
            m = None
            for j in range(n_chunks):
                c = load_chunk(j)
                thresh = valid_last - j * acc_w          # static per chunk
                if mask_tail and thresh < acc_w:
                    lane = jax.lax.broadcasted_iota(jnp.int32, c.shape, 1)
                    keep = lane < thresh
                    cs = jnp.where(keep, c, 0.0)
                    cm = jnp.where(keep, c, -jnp.inf)
                else:
                    cs = c
                    cm = c
                if s is None:
                    s, m = cs, cm
                else:
                    s = s + cs
                    m = jnp.maximum(m, cm)
            sum_acc[...] += s
            max_acc[...] = jnp.maximum(max_acc[...], m)

        if needs_mask:
            # Steady-state steps: no mask work at all.
            @pl.when(hw_i < n_hw - 1)
            def _body():
                accumulate(k, mask_tail=False)

            # Last (partial) block: skip fully-OOB chunks, mask the straddler.
            @pl.when(hw_i == n_hw - 1)
            def _tail():
                accumulate(k_last, mask_tail=True)
        else:
            accumulate(k, mask_tail=False)

        @pl.when(hw_i == n_hw - 1)
        def _finalize():
            # Single cross-lane reduce per batch (XLU), then the shared MLP.
            avg_p = jnp.sum(sum_acc[...], axis=1, keepdims=True) * inv_hw   # (C, 1)
            max_p = jnp.max(max_acc[...], axis=1, keepdims=True)            # (C, 1)

            def fc(p):  # p: (C, 1) column vector; weights in native layout
                h = jnp.dot(w1_ref[...], p, preferred_element_type=jnp.float32)
                h = jnp.maximum(h, 0.0)                                      # ReLU
                return jnp.dot(w2_ref[...], h, preferred_element_type=jnp.float32)

            att = jax.nn.sigmoid(fc(avg_p) + fc(max_p))                      # (C, 1)
            o_ref[0] = att.astype(o_ref.dtype)

    return kernel


def channel_attention(x, w1, w2, *, block_bytes=2 << 20):
    """CBAM ChannelAttention forward.

    x : (B, C, H, W)  NCHW, any float dtype (streamed as-is, accumulated in f32)
    w1: (C//ratio, C) weight of Conv2d(C, C//ratio, 1, bias=False)
    w2: (C, C//ratio) weight of Conv2d(C//ratio, C, 1, bias=False)
    returns sigmoid channel attention of shape (B, C, 1, 1), dtype of x.
    """
    B, C, H, W = x.shape
    HW = H * W
    hidden, c_in = w1.shape
    assert c_in == C and w2.shape == (C, hidden)

    # Free view of contiguous NCHW -- no transpose, no extra HBM traffic.
    x3 = x.reshape(B, C, HW)
    itemsize = jnp.dtype(x3.dtype).itemsize

    # --- spatial tile: ~block_bytes per x block, VMEM-budget + unroll capped.
    budget = 20 << 20                                  # double-buffered x (v7x-safe)
    t = block_bytes // (C * itemsize)
    t = min(t, budget // (2 * C * itemsize))
    t = min(t, 8192)                                   # bounds per-step chunk unroll
    t = max(t, 128)
    if HW >= 128:
        tile_hw = min((t // 128) * 128, (HW // 128) * 128)   # multiple of 128, <= HW
        acc_w = 128
    else:
        tile_hw = HW                                   # single full-dim block
        acc_w = HW
    n_hw = pl.cdiv(HW, tile_hw)
    needs_mask = (HW % tile_hw) != 0                   # last block is partial

    # Tiny MLP weights: keep in f32 (accumulators are f32 anyway).
    w1f = jnp.asarray(w1, jnp.float32)
    w2f = jnp.asarray(w2, jnp.float32)

    kernel = _make_channel_attention_kernel(HW, tile_hw, acc_w, n_hw, needs_mask)

    vmem_need = (2 * tile_hw * C * itemsize            # double-buffered x blocks
                 + 2 * 4 * (w1f.size + w2f.size)       # double-buffered weights
                 + 2 * C * acc_w * 4                   # scratch accumulators
                 + 2 * C * 4)                          # output block
    vmem_limit = int(min(48 << 20, max(vmem_need + (4 << 20), 32 << 20)))

    cost = pl.CostEstimate(
        flops=2 * B * HW * C + 8 * B * C * hidden,
        transcendentals=B * C,
        bytes_accessed=int(x3.size * itemsize + (w1f.size + w2f.size) * 4
                           + B * C * itemsize),
    )

    out = pl.pallas_call(
        kernel,
        out_shape=jax.ShapeDtypeStruct((B, C, 1), x.dtype),
        grid_spec=pltpu.PrefetchScalarGridSpec(
            num_scalar_prefetch=0,
            grid=(B, n_hw),
            in_specs=[
                pl.BlockSpec((1, C, tile_hw), lambda b, h: (b, 0, h)),
                pl.BlockSpec((hidden, C), lambda b, h: (0, 0)),
                pl.BlockSpec((C, hidden), lambda b, h: (0, 0)),
            ],
            out_specs=pl.BlockSpec((1, C, 1), lambda b, h: (b, 0, 0)),
            scratch_shapes=[
                pltpu.VMEM((C, acc_w), jnp.float32),   # running lane-partial sum
                pltpu.VMEM((C, acc_w), jnp.float32),   # running lane-partial max
            ],
        ),
        compiler_params=pltpu.CompilerParams(
            dimension_semantics=("parallel", "arbitrary"),
            vmem_limit_bytes=vmem_limit,
        ),
        cost_estimate=cost,
    )(x3, w1f, w2f)

    return out.reshape(B, C, 1, 1)


def _reference(x, w1, w2):
    # Pure-JAX reference matching the PyTorch forward semantics.
    avg_p = jnp.mean(x, axis=(2, 3))          # (B, C)
    max_p = jnp.max(x, axis=(2, 3))           # (B, C)

    def fc(p):
        h = jnp.maximum(p @ w1.T, 0.0)
        return h @ w2.T

    return jax.nn.sigmoid(fc(avg_p) + fc(max_p)).reshape(*x.shape[:2], 1, 1)


if __name__ == "__main__":
    key = jax.random.PRNGKey(0)
    k_x, k_w1, k_w2, k_x2 = jax.random.split(key, 4)

    # in_planes must be >= ratio (16) so the bottleneck has >= 1 channel.
    B, C, H, W = 2, 32, 16, 16
    ratio = 16
    hidden = C // ratio  # 2

    x = jax.random.normal(k_x, (B, C, H, W), dtype=jnp.float32)
    w1 = jax.random.normal(k_w1, (hidden, C), dtype=jnp.float32) * (2.0 / C) ** 0.5
    w2 = jax.random.normal(k_w2, (C, hidden), dtype=jnp.float32) * (2.0 / hidden) ** 0.5

    ref = _reference(x, w1, w2)

    # 1) Auto-sized tile (HW=256 -> single block per batch).
    out = jax.block_until_ready(channel_attention(x, w1, w2))
    assert out.shape == (B, C, 1, 1)
    assert jnp.allclose(out, ref, atol=1e-5, rtol=1e-5)

    # 2) Forced small tile: multi-step grid reduction over HW, no ragged tail.
    out_t = jax.block_until_ready(channel_attention(x, w1, w2, block_bytes=16 * 1024))
    assert jnp.allclose(out_t, ref, atol=1e-5, rtol=1e-5)

    # 3) Ragged spatial size (15x15 = 225): partial last block + in-kernel mask.
    x2 = jax.random.normal(k_x2, (B, C, 15, 15), dtype=jnp.float32)
    out2 = jax.block_until_ready(channel_attention(x2, w1, w2, block_bytes=16 * 1024))
    ref2 = _reference(x2, w1, w2)
    assert jnp.allclose(out2, ref2, atol=1e-5, rtol=1e-5)

    print("KERNEL_OK")
</pallas_src>

<mosaic_0001>
module attributes {stable_mosaic.version = 11 : i64} {
  func.func @kernel(%arg0: i32, %arg1: i32, %arg2: memref<1x32x256xf32, #tpu.memory_space<vmem>>, %arg3: memref<2x32xf32, #tpu.memory_space<vmem>>, %arg4: memref<32x2xf32, #tpu.memory_space<vmem>>, %arg5: memref<1x32x1xf32, #tpu.memory_space<vmem>>, %arg6: memref<32x128xf32, #tpu.memory_space<vmem>>, %arg7: memref<32x128xf32, #tpu.memory_space<vmem>>) attributes {dimension_semantics = [#tpu.dimension_semantics<parallel>, #tpu.dimension_semantics<arbitrary>], iteration_bounds = array<i64: 2, 1>, scalar_prefetch = 0 : i64, scratch_operands = 2 : i64, tpu.core_type = #tpu.core_type<tc>, window_params = [{transform_indices = @transform_0, window_bounds = array<i64: 1, 32, 256>}, {pipeline_mode = #tpu.pipeline_mode<synchronous>, transform_indices = @transform_1, window_bounds = array<i64: 2, 32>}, {pipeline_mode = #tpu.pipeline_mode<synchronous>, transform_indices = @transform_2, window_bounds = array<i64: 32, 2>}, {transform_indices = @transform_3, window_bounds = array<i64: 1, 32, 1>}]} {
    %c0_i32 = arith.constant 0 : i32
    %0 = arith.cmpi eq, %arg1, %c0_i32 : i32
    %1 = arith.extui %0 : i1 to i32
    %c0_i32_0 = arith.constant 0 : i32
    %2 = arith.cmpi ne, %1, %c0_i32_0 : i32
    scf.if %2 {
      %cst = arith.constant 0.000000e+00 : f32
      %18 = vector.broadcast %cst : f32 to vector<32x128xf32>
      %c0_15 = arith.constant 0 : index
      %c0_16 = arith.constant 0 : index
      %19 = vector.load %arg6[%c0_15, %c0_16] : memref<32x128xf32, #tpu.memory_space<vmem>>, vector<32x128xf32>
      tpu.vector_store %arg6[%c0_15, %c0_16], %18 {strides = array<i32>} : memref<32x128xf32, #tpu.memory_space<vmem>>, vector<32x128xf32>,
      %cst_17 = arith.constant 0xFF800000 : f32
      %20 = vector.broadcast %cst_17 : f32 to vector<32x128xf32>
      %c0_18 = arith.constant 0 : index
      %c0_19 = arith.constant 0 : index
      %21 = vector.load %arg7[%c0_18, %c0_19] : memref<32x128xf32, #tpu.memory_space<vmem>>, vector<32x128xf32>
      tpu.vector_store %arg7[%c0_18, %c0_19], %20 {strides = array<i32>} : memref<32x128xf32, #tpu.memory_space<vmem>>, vector<32x128xf32>,
    } else {
    }
    %c0 = arith.constant 0 : index
    %c0_1 = arith.constant 0 : index
    %c0_2 = arith.constant 0 : index
    %3 = vector.load %arg2[%c0, %c0_1, %c0_2] : memref<1x32x256xf32, #tpu.memory_space<vmem>>, vector<1x32x128xf32>
    %4 = vector.shape_cast %3 : vector<1x32x128xf32> to vector<32x128xf32>
    %c0_3 = arith.constant 0 : index
    %c0_4 = arith.constant 0 : index
    %c128 = arith.constant 128 : index
    %5 = vector.load %arg2[%c0_3, %c0_4, %c128] : memref<1x32x256xf32, #tpu.memory_space<vmem>>, vector<1x32x128xf32>
    %6 = vector.shape_cast %5 : vector<1x32x128xf32> to vector<32x128xf32>
    %7 = arith.addf %4, %6 : vector<32x128xf32>
    %8 = arith.maximumf %4, %6 : vector<32x128xf32>
    %c0_5 = arith.constant 0 : index
    %c0_6 = arith.constant 0 : index
    %9 = vector.load %arg6[%c0_5, %c0_6] : memref<32x128xf32, #tpu.memory_space<vmem>>, vector<32x128xf32>
    %10 = arith.addf %9, %7 : vector<32x128xf32>
    %c0_7 = arith.constant 0 : index
    %c0_8 = arith.constant 0 : index
    %11 = vector.load %arg6[%c0_7, %c0_8] : memref<32x128xf32, #tpu.memory_space<vmem>>, vector<32x128xf32>
    tpu.vector_store %arg6[%c0_7, %c0_8], %10 {strides = array<i32>} : memref<32x128xf32, #tpu.memory_space<vmem>>, vector<32x128xf32>,
    %c0_9 = arith.constant 0 : index
    %c0_10 = arith.constant 0 : index
    %12 = vector.load %arg7[%c0_9, %c0_10] : memref<32x128xf32, #tpu.memory_space<vmem>>, vector<32x128xf32>
    %13 = arith.maximumf %12, %8 : vector<32x128xf32>
    %c0_11 = arith.constant 0 : index
    %c0_12 = arith.constant 0 : index
    %14 = vector.load %arg7[%c0_11, %c0_12] : memref<32x128xf32, #tpu.memory_space<vmem>>, vector<32x128xf32>
    tpu.vector_store %arg7[%c0_11, %c0_12], %13 {strides = array<i32>} : memref<32x128xf32, #tpu.memory_space<vmem>>, vector<32x128xf32>,
    %c0_i32_13 = arith.constant 0 : i32
    %15 = arith.cmpi eq, %arg1, %c0_i32_13 : i32
    %16 = arith.extui %15 : i1 to i32
    %c0_i32_14 = arith.constant 0 : i32
    %17 = arith.cmpi ne, %16, %c0_i32_14 : i32
    scf.if %17 {
      %c0_15 = arith.constant 0 : index
      %c0_16 = arith.constant 0 : index
      %18 = vector.load %arg6[%c0_15, %c0_16] : memref<32x128xf32, #tpu.memory_space<vmem>>, vector<32x128xf32>
      %cst = arith.constant dense<0.000000e+00> : vector<32xf32>
      %19 = vector.multi_reduction <add>, %18, %cst [1] : vector<32x128xf32> to vector<32xf32>
      %20 = vector.shape_cast %19 : vector<32xf32> to vector<32x1xf32>
      %cst_17 = arith.constant 3.906250e-03 : f32
      %21 = vector.broadcast %cst_17 : f32 to vector<32x1xf32>
      %22 = arith.mulf %20, %21 : vector<32x1xf32>
      %c0_18 = arith.constant 0 : index
      %c0_19 = arith.constant 0 : index
      %23 = vector.load %arg7[%c0_18, %c0_19] : memref<32x128xf32, #tpu.memory_space<vmem>>, vector<32x128xf32>
      %cst_20 = arith.constant dense<0xFF800000> : vector<32xf32>
      %24 = vector.multi_reduction <maximumf>, %23, %cst_20 [1] : vector<32x128xf32> to vector<32xf32>
      %25 = vector.shape_cast %24 : vector<32xf32> to vector<32x1xf32>
      %c0_21 = arith.constant 0 : index
      %c0_22 = arith.constant 0 : index
      %26 = vector.load %arg3[%c0_21, %c0_22] : memref<2x32xf32, #tpu.memory_space<vmem>>, vector<2x32xf32>
      %cst_23 = arith.constant dense<0.000000e+00> : vector<2x1xf32>
      %27 = tpu.matmul %26, %22, %cst_23 {dimension_numbers = #tpu.dot_dimension_numbers<[1], [0], [0], [1], [0, 0, 1, 1], [], []>} : vector<2x32xf32>, vector<32x1xf32>, vector<2x1xf32> -> vector<2x1xf32>
      %cst_24 = arith.constant 0.000000e+00 : f32
      %28 = vector.broadcast %cst_24 : f32 to vector<2x1xf32>
      %29 = arith.maximumf %27, %28 : vector<2x1xf32>
      %c0_25 = arith.constant 0 : index
      %c0_26 = arith.constant 0 : index
      %30 = vector.load %arg4[%c0_25, %c0_26] : memref<32x2xf32, #tpu.memory_space<vmem>>, vector<32x2xf32>
      %cst_27 = arith.constant dense<0.000000e+00> : vector<32x1xf32>
      %31 = tpu.matmul %30, %29, %cst_27 {dimension_numbers = #tpu.dot_dimension_numbers<[1], [0], [0], [1], [0, 0, 1, 1], [], []>} : vector<32x2xf32>, vector<2x1xf32>, vector<32x1xf32> -> vector<32x1xf32>
      %c0_28 = arith.constant 0 : index
      %c0_29 = arith.constant 0 : index
      %32 = vector.load %arg3[%c0_28, %c0_29] : memref<2x32xf32, #tpu.memory_space<vmem>>, vector<2x32xf32>
      %cst_30 = arith.constant dense<0.000000e+00> : vector<2x1xf32>
      %33 = tpu.matmul %32, %25, %cst_30 {dimension_numbers = #tpu.dot_dimension_numbers<[1], [0], [0], [1], [0, 0, 1, 1], [], []>} : vector<2x32xf32>, vector<32x1xf32>, vector<2x1xf32> -> vector<2x1xf32>
      %cst_31 = arith.constant 0.000000e+00 : f32
      %34 = vector.broadcast %cst_31 : f32 to vector<2x1xf32>
      %35 = arith.maximumf %33, %34 : vector<2x1xf32>
      %c0_32 = arith.constant 0 : index
      %c0_33 = arith.constant 0 : index
      %36 = vector.load %arg4[%c0_32, %c0_33] : memref<32x2xf32, #tpu.memory_space<vmem>>, vector<32x2xf32>
      %cst_34 = arith.constant dense<0.000000e+00> : vector<32x1xf32>
      %37 = tpu.matmul %36, %35, %cst_34 {dimension_numbers = #tpu.dot_dimension_numbers<[1], [0], [0], [1], [0, 0, 1, 1], [], []>} : vector<32x2xf32>, vector<2x1xf32>, vector<32x1xf32> -> vector<32x1xf32>
      %38 = arith.addf %31, %37 : vector<32x1xf32>
      %39 = arith.negf %38 : vector<32x1xf32>
      %40 = math.exp %39 : vector<32x1xf32>
      %cst_35 = arith.constant 1.000000e+00 : f32
      %41 = vector.broadcast %cst_35 : f32 to vector<32x1xf32>
      %42 = arith.addf %41, %40 : vector<32x1xf32>
      %43 = arith.divf %41, %42 : vector<32x1xf32>
      %c0_36 = arith.constant 0 : index
      %c0_37 = arith.constant 0 : index
      %c0_38 = arith.constant 0 : index
      %44 = vector.load %arg5[%c0_36, %c0_37, %c0_38] : memref<1x32x1xf32, #tpu.memory_space<vmem>>, vector<1x32x1xf32>
      %45 = vector.shape_cast %44 : vector<1x32x1xf32> to vector<32x1xf32>
      %46 = vector.shape_cast %43 : vector<32x1xf32> to vector<1x32x1xf32>
      tpu.vector_store %arg5[%c0_36, %c0_37, %c0_38], %46 {strides = array<i32>} : memref<1x32x1xf32, #tpu.memory_space<vmem>>, vector<1x32x1xf32>,
    } else {
    }
    return
  }
  func.func @transform_0(%arg0: i32, %arg1: i32) -> (i32, i32, i32) {
    %c0_i32 = arith.constant 0 : i32
    %c0_i32_0 = arith.constant 0 : i32
    return %arg0, %c0_i32, %arg1 : i32, i32, i32
  }
  func.func @transform_1(%arg0: i32, %arg1: i32) -> (i32, i32) {
    %c0_i32 = arith.constant 0 : i32
    %c0_i32_0 = arith.constant 0 : i32
    %c0_i32_1 = arith.constant 0 : i32
    return %c0_i32, %c0_i32_0 : i32, i32
  }
  func.func @transform_2(%arg0: i32, %arg1: i32) -> (i32, i32) {
    %c0_i32 = arith.constant 0 : i32
    %c0_i32_0 = arith.constant 0 : i32
    %c0_i32_1 = arith.constant 0 : i32
    return %c0_i32, %c0_i32_0 : i32, i32
  }
  func.func @transform_3(%arg0: i32, %arg1: i32) -> (i32, i32, i32) {
    %c0_i32 = arith.constant 0 : i32
    %c0_i32_0 = arith.constant 0 : i32
    %c0_i32_1 = arith.constant 0 : i32
    return %arg0, %c0_i32, %c0_i32_0 : i32, i32, i32
  }
}

</mosaic_0001>

<bundles_post_ra>
// kernel: tpu_custom_call.1
= control target key start
LH: loop header
LB: loop body
LE: loop exit
PB: predicated region body
PF: predicated region fallthrough
CT: control target
= control target key end

     0   :  { %8 = vsyncpa [#allocation5], 0  ;;  %s1127_s0 = inlined_call_operand.hbm [shape: f32[2,32,256], index: 0, kind: input, shape index: {}]   ;;  %s1128_s1 = inlined_call_operand.vmem [shape: f32[2,32], index: 1, kind: input, shape index: {}]   ;;  %s1129_s2 = inlined_call_operand.vmem [shape: f32[32,2], index: 2, kind: input, shape index: {}]   ;;  %s1130_s3 = inlined_call_operand.vmem [shape: f32[2,32,1], index: 3, kind: output, shape index: {}]  }
   0x1   :  { %10 = vsyncpa [#allocation5 + $0x1], 0  ;;  %s1008_s12 = smov 0   ;;  %s1010_s13 = smov 0  }
   0x2   :  { %s1012_s14 = smov 0   ;;  %s1014_s15 = smov 0  }
   0x3   :  { %s1016_s16 = smov 0   ;;  %s1018_s17 = smov 0  }
   0x4 LB: > { %s739_s18 = sadd.s32 4294967295, %s981_s17   ;;  %s28_s19 = sadd.s32 1, %s977_s16  ;;  %s981_s17 = sphi %s1018_s17, %s16_s17   ;;  %s977_s16 = sphi %s1016_s16, %s1138_s16   ;;  %s973_s15 = sphi %s1014_s15, %s1137_s15   ;;  %s969_s14 = sphi %s1012_s14, %s1136_s14   ;;  %s965_s13 = sphi %s1010_s13, %s1135_s13   ;;  %s961_s12 = sphi %s1008_s12, %s1134_s12  }
   0x5   : > { %p30_p0 = scmp.ge.s32.totalorder %s28_s19, 2  ;;  %s37_s20 = sadd.s32 1, %s969_s14 }
   0x6   : > { %p44_p1 = scmp.ne.s32.totalorder %s969_s14, %s965_s13  ;;  %p45_p2 = scmp.eq.s32.totalorder %s981_s17, 0 }
   0x7   : > { %s1140_s19 = smov (%p30_p0, %s28_s19), 0  ;;  %p50_p4 = scmp.ne.s32.totalorder %s965_s13, %s961_s12 }
   0x8   : > { %p1044_p3 = por %p45_p2, %p44_p1  ;;  %s32_s22 = ssub.s32 %s977_s16, %s1140_s19 }
   0x9   : > { %p51_p5 = scmp.eq.s32.totalorder %s739_s18, 0  ;;  %p35_p6 = scmp.eq.s32.totalorder %s32_s22, 0 }
   0xa   : > { %p834_p8 = scmp.lt.s32.totalorder %s981_s17, 2  ;;  %s148_s25 = sand.u32 1, %s969_s14  }
   0xb   : > { %p1051_p7 = por %p51_p5, %p50_p4  ;;  %s768_s26 = sshll.u32 %s977_s16, 10 }
   0xc   : > { %s1057_s24 = scalar_select %p35_p6, %s969_s14, %s37_s20  }
   0xd   : > { %s743_s27 = sshll.u32 %s148_s25, 6  ;;  %s160_s30 = scalar_lea.hbm %s1127_s0, %s768_s26 }
   0xe   : > { %s152_s4 = scalar_lea.vmem [#allocation4], %s743_s27  ;;  %p1066_p9 = pnand %p834_p8, %p1044_p3 }
   0xf   : > { %s161_s5 = sshll.u32 %s152_s4, 4  ;;  %s149_s7 = scalar_lea.sflag [#allocation5], %s148_s25  ;;  %s162_s5 = int_to_ptr.vmem [resolvable:$true] %s161_s5 }
  0x10   : > { %p905_p10 = pneg %p1066_p9  ;;  %s916_s8 = scalar_lea.vmem %s162_s5, 1024 }
  0x11   : > { %p917_p11 = scmp.ne.s32.totalorder %s162_s5, %s916_s8  ;;  %s983_s9 = smov [#allocation4]  }
  0x12   : > { %s921_s10 = sshll.u32 %s983_s9, 4  ;;  %s922_s10 = int_to_ptr.vmem [resolvable:$false] %s921_s10 }
  0x13   : > { %p919_p12 = pnand %p917_p11, %p905_p10  ;;  %s923_s11 = scalar_lea.vmem %s922_s10, 2048 }
  0x14   : > { %p924_p0 = scmp.lt.s32.totalorder %s162_s5, %s922_s10  ;;  %p925_p1 = scmp.lt.s32.totalorder %s923_s11, %s916_s8 }
  0x15   : > { %p920_p13 = pneg %p919_p12 }
  0x16   : > { %p926_p2 = por %p925_p1, %p924_p0 }
  0x18   : > { %p927_p3 = pnand %p926_p2, %p920_p13 }
  0x1a   : > { %930 = shalt.err (!%p927_p3)
}
  0x1b   : > { %s984_s12 = smov 256   ;;  %s985_s18 = smov 16  }
  0x1c   : > { %833 = dma.hbm_to_vmem [thread:$0]  (!%p1066_p9), %s160_s30, 1024, %s162_s5, %s149_s7, %s984_s12, %s984_s12, %s985_s18  }
  0x1d   : > { %p746_p4 = scmp.ge.s32.totalorder %s981_s17, 1  ;;  %p169_p5 = scmp.lt.s32.totalorder %s981_s17, 3 }
  0x1f   : > { %p170_p6 = pnand %p746_p4, %p169_p5 }
  0x20   : > { %s175_s20 = sand.u32 (!%p170_p6), 1, %s965_s13  }
  0x21   : > { %173 = sbr.rel (%p170_p6) target bundleno = 626 (0x272), region = 32  ;;  %s747_s21 = sshll.u32 (!%p170_p6), %s175_s20, 6 }
  0x22   : > { %s176_s22 = scalar_lea.sflag (!%p170_p6), [#allocation5], %s175_s20  ;;  %s179_s25 = scalar_lea.vmem (!%p170_p6), [#allocation4], %s747_s21 }
  0x26   : > { %956 = dma.done.wait (%p1051_p7), %s176_s22, 1024  }
  0x27   : > { %958 = vsyncadd (%p1051_p7), %s176_s22, 4294966272  ;;  %v223_v0 = vld [vmem:[%s179_s25 + $0x30] sm:$0xff]  ;;  %v227_v1 = vld [vmem:[%s179_s25 + $0x38] sm:$0xff]  ;;  %v986_v16 = vmov 0.0   ;;  %vm987_vm0 = vmmov 0   ;;  %vm292_vm1 = vcmask 261120  }
  0x28   : > { %v222_v2 = vld [vmem:[%s179_s25 + $0x20] sm:$0xff]  ;;  %v231_v3 = vadd.f32 %v227_v1, %v223_v0  ;;  %v235_v4 = vmax.f32 %v223_v0, %v227_v1  ;;  %v226_v5 = vld [vmem:[%s179_s25 + $0x28] sm:$0xff]  ;;  %v221_v6 = vld [vmem:[%s179_s25 + $0x10] sm:$0xff]  ;;  %790 = vmatprep.subr.mxu0 %v986_v16  ;;  %801 = vmatprep.subr.mxu1 %v986_v16  ;;  %vm442_vm2 = vcmask 15360   ;;  %vm455_vm3 = vcmask 1041408   ;;  %p203_p7 = scmp.lt.s32.totalorder %s973_s15, 1 }
  0x29   : > { %v225_v7 = vld [vmem:[%s179_s25 + $0x18] sm:$0xff]  ;;  %v230_v8 = vadd.f32 %v226_v5, %v222_v2  ;;  %v220_v10 = vld [vmem:[%s179_s25] sm:$0xff]  ;;  %v224_v11 = vld [vmem:[%s179_s25 + $0x8] sm:$0xff]  ;;  %v234_v12 = vmax.f32 %v222_v2, %v226_v5  ;;  %798 = vmatprep.mubr.msk.f32.mxu0 %vm987_vm0, %v986_v16  ;;  %809 = vmatprep.mubr.msk.f32.mxu1 %vm987_vm0, %v986_v16  ;;  %vm656_vm4 = vcmask 7168  }
  0x2a   : > { %273 = vadd.xlane.f32.xlu0 %v231_v3  ;;  %289 = vmax.xlane.f32.xlu1 %v235_v4  ;;  %v229_v9 = vadd.f32 %v225_v7, %v221_v6  ;;  %v228_v13 = vadd.f32 %v224_v11, %v220_v10  ;;  %v233_v14 = vmax.f32 %v221_v6, %v225_v7  ;;  %v291_v27 = vld [vmem:[%s1128_s1] sm:$0x3]  ;;  %v368_v34 = vld [vmem:[%s1129_s2 + $0x8] sm:$0xff]  ;;  %v369_v35 = vld [vmem:[%s1129_s2 + $0x10] sm:$0xff]  ;;  %s1142_s15 = smov (!%p203_p7, %s973_s15), 1 }
  0x2b   : > { %v232_v15 = vmax.f32 %v220_v10, %v224_v11  ;;  %v367_v30 = vld [vmem:[%s1129_s2] sm:$0xff]  ;;  %v370_v39 = vld [vmem:[%s1129_s2 + $0x18] sm:$0xff]  ;;  %s769_s8 = sshll.u32 %s1142_s15, 5 }
  0x2c   : > { %s207_s11 = scalar_lea.vmem %s1130_s3, %s769_s8 }
  0x2e   : > { %271 = vadd.xlane.f32.xlu0 %v230_v8  ;;  %269 = vadd.xlane.f32.xlu1 %v229_v9 }
  0x32   : > { %287 = vmax.xlane.f32.xlu0 %v234_v12  ;;  %267 = vadd.xlane.f32.xlu1 %v228_v13 }
  0x36   : > { %285 = vmax.xlane.f32.xlu0 %v233_v14  ;;  %283 = vmax.xlane.f32.xlu1 %v232_v15 }
  0xb3   : > { %v274_v17 = vpop.xlane.xlu0 %273  ;;  %v290_v18 = vpop.xlane.xlu1 %289 }
  0xb4   : > { %v278_v19 = vmul.f32 0.00390625, %v274_v17  ;;  %802 = vmatpush3.msra.mxu1 %v290_v18 }
  0xb5   : > { %803 = vmatprep.subr.mxu1 %v986_v16 }
  0xb6   : > { %791 = vmatpush3.msra.mxu0 %v278_v19 }
  0xb7   : > { %v272_v20 = vpop.xlane.xlu0 %271  ;;  %792 = vmatprep.subr.mxu0 %v986_v16  ;;  %v270_v21 = vpop.xlane.xlu1 %269 }
  0xb8   : > { %v277_v22 = vmul.f32 0.00390625, %v272_v20  ;;  %v276_v23 = vmul.f32 0.00390625, %v270_v21 }
  0xba   : > { %793 = vmatpush3.msra.mxu0 %v277_v22 }
  0xbb   : > { %794 = vmatprep.subr.mxu0 %v986_v16  ;;  %v288_v24 = vpop.xlane.xlu0 %287  ;;  %v268_v25 = vpop.xlane.xlu1 %267 }
  0xbc   : > { %795 = vmatpush3.msra.mxu0 %v276_v23  ;;  %804 = vmatpush3.msra.mxu1 %v288_v24  ;;  %v275_v26 = vmul.f32 0.00390625, %v268_v25 }
  0xbd   : > { %805 = vmatprep.subr.mxu1 %v986_v16  ;;  %796 = vmatprep.subr.mxu0 %v986_v16 }
  0xbe   : > { %797 = vmatpush3.msra.mxu0 %v275_v26 }
  0xbf   : > { %v286_v28 = vpop.xlane.xlu0 %285  ;;  %799 = vmatmul.mubr.msk.f32.vlgmr.msra.gmra.mxu0 %vm292_vm1, %v291_v27  ;;  %v284_v29 = vpop.xlane.xlu1 %283 }
  0xc0   : > { %806 = vmatpush3.msra.mxu1 %v286_v28  ;;  %814 = vmatprep.mubr.msk.f32.mxu0 %vm442_vm2, %v367_v30 }
  0xc1   : > { %807 = vmatprep.subr.mxu1 %v986_v16 }
  0xc2   : > { %808 = vmatpush3.msra.mxu1 %v284_v29 }
  0xc3   : > { %810 = vmatmul.mubr.msk.f32.vlgmr.msra.gmra.mxu1 %vm292_vm1, %v291_v27 }
  0xc4   : > { %822 = vmatprep.mubr.msk.f32.mxu1 %vm442_vm2, %v367_v30 }
 0x17f   : > { %v362_v31 = vpop.f32.mrf.mxu0 }
 0x180   : > { %v366_v32 = vmax.f32 %v362_v31, 0.0 }
 0x181   : > { %v800_v33 = vpop.f32.mrf.mxu0 }
 0x182   : > { %820 = vmatprep.subr.msk.mxu1 %vm455_vm3, %v366_v32 }
 0x183   : > { %v437_v36 = vpop.f32.mrf.mxu1  ;;  %821 = vmatpush3.msk.msra.mxu1 %vm455_vm3, %v366_v32 }
 0x184   : > { %v441_v37 = vmax.f32 %v437_v36, 0.0  ;;  %823 = vmatmul.mubr.msk.f32.vlgmr.msra.gmra.mxu1 %vm442_vm2, %v368_v34 }
 0x185   : > { %v811_v38 = vpop.f32.mrf.mxu1  ;;  %825 = vmatprep.mubr.msk.f32.mxu1 %vm442_vm2, %v369_v35 }
 0x186   : > { %812 = vmatprep.subr.msk.mxu0 %vm455_vm3, %v441_v37 }
 0x187   : > { %813 = vmatpush3.msk.msra.mxu0 %vm455_vm3, %v441_v37 }
 0x188   : > { %815 = vmatmul.mubr.msk.f32.vlgmr.msra.gmra.mxu0 %vm442_vm2, %v368_v34  ;;  %826 = vmatmul.mubr.msk.f32.gmra.mxu1 %vm442_vm2, %v370_v39 }
 0x189   : > { %817 = vmatprep.mubr.msk.f32.mxu0 %vm442_vm2, %v369_v35 }
 0x18c   : > { %818 = vmatmul.mubr.msk.f32.gmra.mxu0 %vm442_vm2, %v370_v39 }
 0x244   : > { %v824_v40 = vpop.f32.mrf.mxu1 }
 0x246   : > { %v613_v41 = vpop.f32.mrf.mxu1 }
 0x248   : > { %v816_v42 = vpop.f32.mrf.mxu0  ;;  %v827_v45 = vpop.f32.mrf.mxu1 }
 0x249   : > { %v619_v43 = vadd.f32 %v824_v40, %v816_v42 }
 0x24a   : > { %v525_v44 = vpop.f32.mrf.mxu0  ;;  %v623_v52 = vpop.f32.mrf.mxu1 }
 0x24b   : > { %v763_v46 = vmul.f32 -1.442695, %v619_v43  ;;  %v614_v47 = vadd.f32 %v613_v41, %v525_v44 }
 0x24c   : > { %v819_v48 = vpop.f32.mrf.mxu0 }
 0x24d   : > { %887 = vpow2.f32 %v763_v46  ;;  %v762_v49 = vmul.f32 -1.442695, %v614_v47  ;;  %v629_v50 = vadd.f32 %v827_v45, %v819_v48 }
 0x24e   : > { %v535_v51 = vpop.f32.mrf.mxu0 }
 0x24f   : > { %889 = vpow2.f32 %v762_v49  ;;  %v765_v53 = vmul.f32 -1.442695, %v629_v50  ;;  %v624_v54 = vadd.f32 %v623_v52, %v535_v51 }
 0x251   : > { %891 = vpow2.f32 %v765_v53  ;;  %v764_v55 = vmul.f32 -1.442695, %v624_v54 }
 0x253   : > { %893 = vpow2.f32 %v764_v55 }
 0x25a   : > { %v888_v56 = vpop.eup %887 }
 0x25b   : > { %v645_v57 = vadd.f32 1.0, %v888_v56 }
 0x25c   : > { %v890_v58 = vpop.eup %889 }
 0x25d   : > { %895 = vrcp.f32 %v645_v57  ;;  %v644_v59 = vadd.f32 1.0, %v890_v58 }
 0x25e   : > { %v892_v60 = vpop.eup %891 }
 0x25f   : > { %897 = vrcp.f32 %v644_v59  ;;  %v647_v61 = vadd.f32 1.0, %v892_v60 }
 0x260   : > { %v894_v62 = vpop.eup %893 }
 0x261   : > { %899 = vrcp.f32 %v647_v61  ;;  %v646_v63 = vadd.f32 1.0, %v894_v62 }
 0x263   : > { %901 = vrcp.f32 %v646_v63 }
 0x26a   : > { %v896_v0 = vpop.eup %895 }
 0x26b   : > { %658 = vst.msk [vmem:[%s207_s11 + $0x8] sm:$0xff] %vm656_vm4, %v896_v0 }
 0x26c   : > { %v898_v1 = vpop.eup %897 }
 0x26d   : > { %657 = vst.msk [vmem:[%s207_s11] sm:$0xff] %vm656_vm4, %v898_v1 }
 0x26e   : > { %v900_v2 = vpop.eup %899 }
 0x26f   : > { %660 = vst.msk [vmem:[%s207_s11 + $0x18] sm:$0xff] %vm656_vm4, %v900_v2 }
 0x270   : > { %v902_v3 = vpop.eup %901 }
 0x271   : > { %659 = vst.msk [vmem:[%s207_s11 + $0x10] sm:$0xff] %vm656_vm4, %v902_v3 }
 0x272 PF: > { %s16_s17 = sadd.s32 1, %s981_s17   ;;  %s1134_s12 = smov %s965_s13 }
 0x273   : > { %p13_p8 = scmp.ge.s32.totalorder %s16_s17, 4   ;;  %s1135_s13 = smov %s969_s14 }
 0x274   : > { %s1136_s14 = smov %s1057_s24  ;;  %s1137_s15 = smov %s977_s16 }
 0x275   : > { %s1138_s16 = smov %s1140_s19  ;;  %15 = sbr.rel (!%p13_p8) target bundleno = 4 (0x4), region = 80 }
 0x27a   :  { %682 = vsyncpa [#allocation5], 1 }
 0x27b   :  { %684 = vsyncpa [#allocation5 + $0x1], 1 }

</bundles_post_ra>
